<compile_context>
chip_gen: v7x
topology: tpu7x:2x2x1
jax: 0.10.0
libtpu: 0.0.40
codegen_flags: <defaults>
</compile_context>

<pallas_src>
import functools

import jax
import jax.numpy as jnp
from jax.experimental import pallas as pl
from jax.experimental.pallas import tpu as pltpu


def _critic_q_kernel(state_ref, action_ref,
                     w1s_ref, w1a_ref, b1_ref,
                     w2_ref, b2_ref,
                     w3_ref, b3_ref,
                     o_ref, *, n_heads, compute_dtype):
    # MXU operands may be bf16; bias add / ReLU stay f32 on the VPU.
    s_mm = state_ref[...].astype(compute_dtype)
    a_mm = action_ref[...].astype(compute_dtype)

    for head in range(n_heads):  # static (unrolled) loop over fused critics
        # fc1 -- concat fused away: x @ W1 == state @ W1_s + action @ W1_a
        h1 = (jnp.dot(s_mm, w1s_ref[head], preferred_element_type=jnp.float32)
              + jnp.dot(a_mm, w1a_ref[head], preferred_element_type=jnp.float32))
        h1 = jnp.maximum(h1 + b1_ref[head], 0.0)
        # fc2 + ReLU
        h2 = jnp.dot(h1.astype(compute_dtype), w2_ref[head],
                     preferred_element_type=jnp.float32)
        h2 = jnp.maximum(h2 + b2_ref[head], 0.0)
        # fc3 (scalar bias from SMEM)
        q = jnp.dot(h2.astype(compute_dtype), w3_ref[head],
                    preferred_element_type=jnp.float32)
        o_ref[:, head:head + 1] = (q + b3_ref[head]).astype(o_ref.dtype)


def critic_q_forward(state, action, stacked_params, *,
                     compute_dtype=jnp.float32, batch_tile=256):
    """state: (B, s_dim), action: (B, a_dim) -> q: (B, n_heads) float32."""
    w1s, w1a, b1, w2, b2, w3, b3 = stacked_params
    n_heads, s_dim, h_dim = w1s.shape
    a_dim = w1a.shape[1]
    B = state.shape[0]

    state = state.astype(jnp.float32)
    action = action.astype(jnp.float32)

    # One-time weight cast for the MXU; biases stay f32 (used in VPU adds).
    w1s = w1s.astype(compute_dtype)
    w1a = w1a.astype(compute_dtype)
    w2 = w2.astype(compute_dtype)
    w3 = w3.astype(compute_dtype)
    b1 = b1.astype(jnp.float32)
    b2 = b2.astype(jnp.float32)
    b3 = b3.astype(jnp.float32)

    # Batch tiling: single block for small B, otherwise a 1-D parallel grid.
    if B <= batch_tile:
        tm, b_pad = B, B
    else:
        tm = batch_tile
        b_pad = pl.cdiv(B, tm) * tm
        if b_pad != B:
            pad = b_pad - B
            state = jnp.pad(state, ((0, pad), (0, 0)))
            action = jnp.pad(action, ((0, pad), (0, 0)))
    grid = (b_pad // tm,)

    def resident(shape):
        # Same block index every grid step => DMA'd once, stays in VMEM.
        return pl.BlockSpec(shape, lambda i: (0,) * len(shape))

    kernel = functools.partial(_critic_q_kernel, n_heads=n_heads,
                               compute_dtype=compute_dtype)

    out = pl.pallas_call(
        kernel,
        out_shape=jax.ShapeDtypeStruct((b_pad, n_heads), jnp.float32),
        grid=grid,
        in_specs=[
            pl.BlockSpec((tm, s_dim), lambda i: (i, 0)),        # state tile
            pl.BlockSpec((tm, a_dim), lambda i: (i, 0)),        # action tile
            resident(w1s.shape),                                # (n, s_dim, h)
            resident(w1a.shape),                                # (n, a_dim, h)
            resident(b1.shape),                                 # (n, 1, h)
            resident(w2.shape),                                 # (n, h, h)
            resident(b2.shape),                                 # (n, 1, h)
            resident(w3.shape),                                 # (n, h, 1)
            pl.BlockSpec(memory_space=pltpu.MemorySpace.SMEM),  # b3: (n,) scalars
        ],
        out_specs=pl.BlockSpec((tm, n_heads), lambda i: (i, 0)),
        compiler_params=pltpu.CompilerParams(
            dimension_semantics=("parallel",)),
    )(state, action, w1s, w1a, b1, w2, b2, w3, b3)

    return out[:B] if b_pad != B else out


def stack_critic_params(params_list, s_dim):
    """One-time prep: split fc1 (concat fused into the kernel) and stack n
    critics along a leading head axis so they run in a single pallas_call."""
    w1s = jnp.stack([p[0][:s_dim] for p in params_list])            # (n, s_dim, h)
    w1a = jnp.stack([p[0][s_dim:] for p in params_list])            # (n, a_dim, h)
    b1 = jnp.stack([p[1].reshape(1, -1) for p in params_list])      # (n, 1, h)
    w2 = jnp.stack([p[2] for p in params_list])                     # (n, h, h)
    b2 = jnp.stack([p[3].reshape(1, -1) for p in params_list])      # (n, 1, h)
    w3 = jnp.stack([p[4] for p in params_list])                     # (n, h, 1)
    b3 = jnp.stack([p[5].reshape(()) for p in params_list])         # (n,)
    return (w1s, w1a, b1, w2, b2, w3, b3)


def init_critic_q_params(key, s_dim, a_dim, h_dim, init_w=0.003):
    """Matches Critic_Q.__init__ + init_weights: fc1/fc2 use nn.Linear default
    U(-1/sqrt(fan_in), 1/sqrt(fan_in)); fc3 weight/bias use U(-init_w, init_w)."""
    ks = jax.random.split(key, 6)
    in1 = s_dim + a_dim

    def lin_default(kw, kb, fan_in, fan_out):
        bound = 1.0 / jnp.sqrt(float(fan_in))
        w = jax.random.uniform(kw, (fan_in, fan_out), jnp.float32, -bound, bound)
        b = jax.random.uniform(kb, (1, fan_out), jnp.float32, -bound, bound)
        return w, b

    w1, b1 = lin_default(ks[0], ks[1], in1, h_dim)
    w2, b2 = lin_default(ks[2], ks[3], h_dim, h_dim)
    w3 = jax.random.uniform(ks[4], (h_dim, 1), jnp.float32, -init_w, init_w)
    b3 = jax.random.uniform(ks[5], (1, 1), jnp.float32, -init_w, init_w)
    return (w1, b1, w2, b2, w3, b3)


if __name__ == "__main__":
    # Pendulum-like sizes: s_dim=3, a_dim=1, hidden=32, batch=8.
    s_dim, a_dim, h_dim, batch = 3, 1, 32, 8

    key = jax.random.PRNGKey(0)
    k_state, k_action, k_p1, k_p2, k_big = jax.random.split(key, 5)

    state = jax.random.normal(k_state, (batch, s_dim), jnp.float32)
    action = jax.random.normal(k_action, (batch, a_dim), jnp.float32)
    params_q1 = init_critic_q_params(k_p1, s_dim, a_dim, h_dim)
    params_q2 = init_critic_q_params(k_p2, s_dim, a_dim, h_dim)

    def ref_forward(st, ac, p):
        w1, b1, w2, b2, w3, b3 = p
        x = jnp.concatenate([st, ac], axis=1)
        h = jnp.maximum(x @ w1 + b1, 0.0)
        h = jnp.maximum(h @ w2 + b2, 0.0)
        return h @ w3 + b3

    # 1) Single critic: exact Critic_Q.forward semantics, output (B, 1).
    single = stack_critic_params([params_q1], s_dim)
    q = critic_q_forward(state, action, single)
    jax.block_until_ready(q)
    ref1 = ref_forward(state, action, params_q1)
    assert q.shape == (batch, 1)
    assert jnp.allclose(q, ref1, atol=1e-5, rtol=1e-5)

    # 2) Both SAC critics fused into one pallas_call: output (B, 2).
    fused = stack_critic_params([params_q1, params_q2], s_dim)
    q12 = critic_q_forward(state, action, fused)
    jax.block_until_ready(q12)
    ref2 = ref_forward(state, action, params_q2)
    assert q12.shape == (batch, 2)
    assert jnp.allclose(q12[:, 0:1], ref1, atol=1e-5, rtol=1e-5)
    assert jnp.allclose(q12[:, 1:2], ref2, atol=1e-5, rtol=1e-5)

    # 3) Training-sized batch exercising the 1-D batch grid (+ padding path).
    big_b = 300
    ks, ka = jax.random.split(k_big)
    big_state = jax.random.normal(ks, (big_b, s_dim), jnp.float32)
    big_action = jax.random.normal(ka, (big_b, a_dim), jnp.float32)
    q_big = critic_q_forward(big_state, big_action, fused, batch_tile=128)
    jax.block_until_ready(q_big)
    ref_big = jnp.concatenate([ref_forward(big_state, big_action, params_q1),
                               ref_forward(big_state, big_action, params_q2)],
                              axis=1)
    assert q_big.shape == (big_b, 2)
    assert jnp.allclose(q_big, ref_big, atol=1e-5, rtol=1e-5)

    # 4) bf16 MXU-input fast path (f32 accumulate, f32 bias/ReLU) — v6e/v7x.
    q_bf16 = critic_q_forward(state, action, fused, compute_dtype=jnp.bfloat16)
    jax.block_until_ready(q_bf16)
    assert q_bf16.shape == (batch, 2)
    assert jnp.allclose(q_bf16, jnp.concatenate([ref1, ref2], axis=1),
                        atol=5e-3, rtol=5e-2)

    print("KERNEL_OK")
</pallas_src>

<mosaic_0001>
module attributes {stable_mosaic.version = 11 : i64} {
  func.func @_critic_q_kernel(%arg0: i32, %arg1: memref<8x3xf32, #tpu.memory_space<vmem>>, %arg2: memref<8x1xf32, #tpu.memory_space<vmem>>, %arg3: memref<1x3x32xf32, #tpu.memory_space<vmem>>, %arg4: memref<1x1x32xf32, #tpu.memory_space<vmem>>, %arg5: memref<1x1x32xf32, #tpu.memory_space<vmem>>, %arg6: memref<1x32x32xf32, #tpu.memory_space<vmem>>, %arg7: memref<1x1x32xf32, #tpu.memory_space<vmem>>, %arg8: memref<1x32x1xf32, #tpu.memory_space<vmem>>, %arg9: memref<1xf32, #tpu.memory_space<smem>>, %arg10: memref<8x1xf32, #tpu.memory_space<vmem>>) attributes {dimension_semantics = [#tpu.dimension_semantics<parallel>], iteration_bounds = array<i64: 1>, scalar_prefetch = 0 : i64, scratch_operands = 0 : i64, tpu.core_type = #tpu.core_type<tc>, window_params = [{transform_indices = @transform_0, window_bounds = array<i64: 8, 3>}, {transform_indices = @transform_1, window_bounds = array<i64: 8, 1>}, {pipeline_mode = #tpu.pipeline_mode<synchronous>, transform_indices = @transform_2, window_bounds = array<i64: 1, 3, 32>}, {pipeline_mode = #tpu.pipeline_mode<synchronous>, transform_indices = @transform_3, window_bounds = array<i64: 1, 1, 32>}, {pipeline_mode = #tpu.pipeline_mode<synchronous>, transform_indices = @transform_4, window_bounds = array<i64: 1, 1, 32>}, {pipeline_mode = #tpu.pipeline_mode<synchronous>, transform_indices = @transform_5, window_bounds = array<i64: 1, 32, 32>}, {pipeline_mode = #tpu.pipeline_mode<synchronous>, transform_indices = @transform_6, window_bounds = array<i64: 1, 1, 32>}, {pipeline_mode = #tpu.pipeline_mode<synchronous>, transform_indices = @transform_7, window_bounds = array<i64: 1, 32, 1>}, {transform_indices = @transform_8, window_bounds = array<i64: 1>}, {transform_indices = @transform_9, window_bounds = array<i64: 8, 1>}]} {
    %c0 = arith.constant 0 : index
    %c0_0 = arith.constant 0 : index
    %0 = vector.load %arg1[%c0, %c0_0] : memref<8x3xf32, #tpu.memory_space<vmem>>, vector<8x3xf32>
    %c0_1 = arith.constant 0 : index
    %c0_2 = arith.constant 0 : index
    %1 = vector.load %arg2[%c0_1, %c0_2] : memref<8x1xf32, #tpu.memory_space<vmem>>, vector<8x1xf32>
    %c0_3 = arith.constant 0 : index
    %c0_4 = arith.constant 0 : index
    %c0_5 = arith.constant 0 : index
    %2 = vector.load %arg3[%c0_3, %c0_4, %c0_5] : memref<1x3x32xf32, #tpu.memory_space<vmem>>, vector<1x3x32xf32>
    %3 = vector.shape_cast %2 : vector<1x3x32xf32> to vector<3x32xf32>
    %cst = arith.constant dense<0.000000e+00> : vector<8x32xf32>
    %4 = tpu.matmul %0, %3, %cst {dimension_numbers = #tpu.dot_dimension_numbers<[1], [0], [0], [1], [0, 0, 1, 1], [], []>} : vector<8x3xf32>, vector<3x32xf32>, vector<8x32xf32> -> vector<8x32xf32>
    %c0_6 = arith.constant 0 : index
    %c0_7 = arith.constant 0 : index
    %c0_8 = arith.constant 0 : index
    %5 = vector.load %arg4[%c0_6, %c0_7, %c0_8] : memref<1x1x32xf32, #tpu.memory_space<vmem>>, vector<1x1x32xf32>
    %6 = vector.shape_cast %5 : vector<1x1x32xf32> to vector<1x32xf32>
    %cst_9 = arith.constant dense<0.000000e+00> : vector<8x32xf32>
    %7 = tpu.matmul %1, %6, %cst_9 {dimension_numbers = #tpu.dot_dimension_numbers<[1], [0], [0], [1], [0, 0, 1, 1], [], []>} : vector<8x1xf32>, vector<1x32xf32>, vector<8x32xf32> -> vector<8x32xf32>
    %8 = arith.addf %4, %7 : vector<8x32xf32>
    %c0_10 = arith.constant 0 : index
    %c0_11 = arith.constant 0 : index
    %c0_12 = arith.constant 0 : index
    %9 = vector.load %arg5[%c0_10, %c0_11, %c0_12] : memref<1x1x32xf32, #tpu.memory_space<vmem>>, vector<1x1x32xf32>
    %10 = vector.shape_cast %9 : vector<1x1x32xf32> to vector<1x32xf32>
    %11 = vector.broadcast %10 : vector<1x32xf32> to vector<8x32xf32>
    %12 = arith.addf %8, %11 : vector<8x32xf32>
    %cst_13 = arith.constant 0.000000e+00 : f32
    %13 = vector.broadcast %cst_13 : f32 to vector<8x32xf32>
    %14 = arith.maximumf %12, %13 : vector<8x32xf32>
    %c0_14 = arith.constant 0 : index
    %c0_15 = arith.constant 0 : index
    %c0_16 = arith.constant 0 : index
    %15 = vector.load %arg6[%c0_14, %c0_15, %c0_16] : memref<1x32x32xf32, #tpu.memory_space<vmem>>, vector<1x32x32xf32>
    %16 = vector.shape_cast %15 : vector<1x32x32xf32> to vector<32x32xf32>
    %cst_17 = arith.constant dense<0.000000e+00> : vector<8x32xf32>
    %17 = tpu.matmul %14, %16, %cst_17 {dimension_numbers = #tpu.dot_dimension_numbers<[1], [0], [0], [1], [0, 0, 1, 1], [], []>} : vector<8x32xf32>, vector<32x32xf32>, vector<8x32xf32> -> vector<8x32xf32>
    %c0_18 = arith.constant 0 : index
    %c0_19 = arith.constant 0 : index
    %c0_20 = arith.constant 0 : index
    %18 = vector.load %arg7[%c0_18, %c0_19, %c0_20] : memref<1x1x32xf32, #tpu.memory_space<vmem>>, vector<1x1x32xf32>
    %19 = vector.shape_cast %18 : vector<1x1x32xf32> to vector<1x32xf32>
    %20 = vector.broadcast %19 : vector<1x32xf32> to vector<8x32xf32>
    %21 = arith.addf %17, %20 : vector<8x32xf32>
    %cst_21 = arith.constant 0.000000e+00 : f32
    %22 = vector.broadcast %cst_21 : f32 to vector<8x32xf32>
    %23 = arith.maximumf %21, %22 : vector<8x32xf32>
    %c0_22 = arith.constant 0 : index
    %c0_23 = arith.constant 0 : index
    %c0_24 = arith.constant 0 : index
    %24 = vector.load %arg8[%c0_22, %c0_23, %c0_24] : memref<1x32x1xf32, #tpu.memory_space<vmem>>, vector<1x32x1xf32>
    %25 = vector.shape_cast %24 : vector<1x32x1xf32> to vector<32x1xf32>
    %cst_25 = arith.constant dense<0.000000e+00> : vector<8x1xf32>
    %26 = tpu.matmul %23, %25, %cst_25 {dimension_numbers = #tpu.dot_dimension_numbers<[1], [0], [0], [1], [0, 0, 1, 1], [], []>} : vector<8x32xf32>, vector<32x1xf32>, vector<8x1xf32> -> vector<8x1xf32>
    %c0_26 = arith.constant 0 : index
    %27 = memref.load %arg9[%c0_26] : memref<1xf32, #tpu.memory_space<smem>>
    %28 = vector.broadcast %27 : f32 to vector<8x1xf32>
    %29 = arith.addf %26, %28 : vector<8x1xf32>
    %c0_27 = arith.constant 0 : index
    %c0_28 = arith.constant 0 : index
    %30 = vector.load %arg10[%c0_27, %c0_28] : memref<8x1xf32, #tpu.memory_space<vmem>>, vector<8x1xf32>
    tpu.vector_store %arg10[%c0_27, %c0_28], %29 {strides = array<i32>} : memref<8x1xf32, #tpu.memory_space<vmem>>, vector<8x1xf32>,
    return
  }
  func.func @transform_0(%arg0: i32) -> (i32, i32) {
    %c0_i32 = arith.constant 0 : i32
    %c0_i32_0 = arith.constant 0 : i32
    return %arg0, %c0_i32 : i32, i32
  }
  func.func @transform_1(%arg0: i32) -> (i32, i32) {
    %c0_i32 = arith.constant 0 : i32
    %c0_i32_0 = arith.constant 0 : i32
    return %arg0, %c0_i32 : i32, i32
  }
  func.func @transform_2(%arg0: i32) -> (i32, i32, i32) {
    %c0_i32 = arith.constant 0 : i32
    %c0_i32_0 = arith.constant 0 : i32
    %c0_i32_1 = arith.constant 0 : i32
    %c0_i32_2 = arith.constant 0 : i32
    return %c0_i32, %c0_i32_0, %c0_i32_1 : i32, i32, i32
  }
  func.func @transform_3(%arg0: i32) -> (i32, i32, i32) {
    %c0_i32 = arith.constant 0 : i32
    %c0_i32_0 = arith.constant 0 : i32
    %c0_i32_1 = arith.constant 0 : i32
    %c0_i32_2 = arith.constant 0 : i32
    return %c0_i32, %c0_i32_0, %c0_i32_1 : i32, i32, i32
  }
  func.func @transform_4(%arg0: i32) -> (i32, i32, i32) {
    %c0_i32 = arith.constant 0 : i32
    %c0_i32_0 = arith.constant 0 : i32
    %c0_i32_1 = arith.constant 0 : i32
    %c0_i32_2 = arith.constant 0 : i32
    return %c0_i32, %c0_i32_0, %c0_i32_1 : i32, i32, i32
  }
  func.func @transform_5(%arg0: i32) -> (i32, i32, i32) {
    %c0_i32 = arith.constant 0 : i32
    %c0_i32_0 = arith.constant 0 : i32
    %c0_i32_1 = arith.constant 0 : i32
    %c0_i32_2 = arith.constant 0 : i32
    return %c0_i32, %c0_i32_0, %c0_i32_1 : i32, i32, i32
  }
  func.func @transform_6(%arg0: i32) -> (i32, i32, i32) {
    %c0_i32 = arith.constant 0 : i32
    %c0_i32_0 = arith.constant 0 : i32
    %c0_i32_1 = arith.constant 0 : i32
    %c0_i32_2 = arith.constant 0 : i32
    return %c0_i32, %c0_i32_0, %c0_i32_1 : i32, i32, i32
  }
  func.func @transform_7(%arg0: i32) -> (i32, i32, i32) {
    %c0_i32 = arith.constant 0 : i32
    %c0_i32_0 = arith.constant 0 : i32
    %c0_i32_1 = arith.constant 0 : i32
    %c0_i32_2 = arith.constant 0 : i32
    return %c0_i32, %c0_i32_0, %c0_i32_1 : i32, i32, i32
  }
  func.func @transform_8(%arg0: i32) -> i32 {
    %c0_i32 = arith.constant 0 : i32
    %c0_i32_0 = arith.constant 0 : i32
    return %c0_i32 : i32
  }
  func.func @transform_9(%arg0: i32) -> (i32, i32) {
    %c0_i32 = arith.constant 0 : i32
    %c0_i32_0 = arith.constant 0 : i32
    return %arg0, %c0_i32 : i32, i32
  }
}

</mosaic_0001>

<bundles_post_ra>
// kernel: tpu_custom_call.1
= control target key start
LH: loop header
LB: loop body
LE: loop exit
PB: predicated region body
PF: predicated region fallthrough
CT: control target
= control target key end

     0   :  { %vm41_vm0 = vcmask 1040384   ;;  %vm119_vm1 = vcmask 1042432   ;;  %v441_v0 = vmov 0.0   ;;  %vm37_vm2 = vcmask 7168   ;;  %s544_s3 = inlined_call_operand.vmem [shape: f32[1,1,32], index: 3, kind: input, shape index: {}]   ;;  %s545_s2 = inlined_call_operand.vmem [shape: f32[1,3,32], index: 2, kind: input, shape index: {}]   ;;  %s546_s1 = inlined_call_operand.vmem [shape: f32[8,1], index: 1, kind: input, shape index: {}]   ;;  %s547_s0 = inlined_call_operand.vmem [shape: f32[8,3], index: 0, kind: input, shape index: {}]   ;;  %s548_s5 = inlined_call_operand.vmem [shape: f32[1,32,32], index: 5, kind: input, shape index: {}]   ;;  %s549_s7 = inlined_call_operand.vmem [shape: f32[1,32,1], index: 7, kind: input, shape index: {}]   ;;  %s550_s4 = inlined_call_operand.vmem [shape: f32[1,1,32], index: 4, kind: input, shape index: {}]   ;;  %s551_s6 = inlined_call_operand.vmem [shape: f32[1,1,32], index: 6, kind: input, shape index: {}]   ;;  %s552_s8 = inlined_call_operand.<no memory space> [shape: f32[1], index: 8, kind: input, shape index: {}]   ;;  %s553_s9 = inlined_call_operand.vmem [shape: f32[8,1], index: 9, kind: output, shape index: {}]  }
   0x1   :  { %394 = vmatprep.subr.mxu0 %v441_v0  ;;  %399 = vmatprep.subr.mxu1 %v441_v0  ;;  %v36_v1 = vld [vmem:[%s544_s3] sm:$0x1]  ;;  %vm442_vm3 = vmmov 0   ;;  %vm115_vm4 = vcmask 23552   ;;  %v443_v5 = vmov 0.0|0.0   ;;  %v203_v7 = vld [vmem:[%s548_s5 + $0x8] sm:$0xff]  ;;  %v293_v31 = vstv %s552_s8 }
   0x2   :  { %v35_v2 = vld [vmem:[%s545_s2] sm:$0x7]  ;;  %395 = vmatpush3.msk.msra.mxu0 %vm41_vm0, %v36_v1  ;;  %396 = vmatprep.mubr.msk.f32.mxu0 %vm442_vm3, %v441_v0  ;;  %v204_v9 = vld [vmem:[%s548_s5 + $0x10] sm:$0xff]  ;;  %v205_v10 = vld [vmem:[%s548_s5 + $0x18] sm:$0xff]  ;;  %vm213_vm5 = vcmask 261120  }
   0x3   :  { %v34_v3 = vld [vmem:[%s546_s1] sm:$0xff]  ;;  %400 = vmatpush3.msk.msra.mxu1 %vm119_vm1, %v35_v2  ;;  %401 = vmatprep.mubr.msk.f32.mxu1 %vm442_vm3, %v441_v0  ;;  %v430_v11 = vpack.c.bf16 %v205_v10, %v204_v9  ;;  %v289_v13 = vld [vmem:[%s549_s7 + $0x8] sm:$0xff]  ;;  %v290_v23 = vld [vmem:[%s549_s7 + $0x10] sm:$0xff] }
   0x4   :  { %v33_v4 = vld [vmem:[%s547_s0] sm:$0xff]  ;;  %397 = vmatmul.mubr.msk.f32.vlgmr.msra.gmra.mrb[0].mxu0 %vm37_vm2, %v34_v3  ;;  %426 = vmatprep.subr.bf16.mxu0 %v443_v5  ;;  %v291_v24 = vld [vmem:[%s549_s7 + $0x18] sm:$0xff] }
   0x5   :  { %402 = vmatmul.mubr.msk.f32.vlgmr.msra.gmra.mrb[0].mxu1 %vm115_vm4, %v33_v4  ;;  %412 = vmatprep.mubr.msk.f32.mxu0 %vm442_vm3, %v441_v0  ;;  %v202_v6 = vld [vmem:[%s548_s5] sm:$0xff]  ;;  %v436_v25 = vpack.c.bf16 %v291_v24, %v290_v23 }
   0x6   :  { %432 = vmatprep.subr.bf16.mxu1 %v443_v5  ;;  %423 = vmatprep.mubr.msk.f32.mxu1 %vm442_vm3, %v441_v0  ;;  %v427_v8 = vpack.c.bf16 %v203_v7, %v202_v6  ;;  %v288_v12 = vld [vmem:[%s549_s7] sm:$0xff] }
   0x7   :  { %v433_v14 = vpack.c.bf16 %v289_v13, %v288_v12  ;;  %v376_v17 = vld [vmem:[%s550_s4] ss:$0 sm:$0xff] }
   0x8   :  { %428 = vmatpush3.bf16.msra.mxu0 %v427_v8  ;;  %v377_v26 = vld [vmem:[%s551_s6] ss:$0 sm:$0xff] }
   0x9   :  { %429 = vmatprep.subr.bf16.mxu0 %v443_v5  ;;  %434 = vmatpush3.bf16.msra.mxu1 %v433_v14 }
   0xa   :  { %435 = vmatprep.subr.bf16.mxu1 %v443_v5 }
   0xc   :  { %431 = vmatpush3.bf16.msra.mxu0 %v430_v11 }
   0xd   :  { %437 = vmatpush3.bf16.msra.mxu1 %v436_v25 }
  0xd7   :  { %v111_v15 = vpop.f32.mrb[0].mxu0 }
  0xd8   :  { %v189_v16 = vpop.f32.mrb[0].mxu1  ;;  %v398_v19 = vpop.f32.mrb[1].mxu0 }
  0xd9   :  { %v190_v18 = vadd.f32 %v189_v16, %v111_v15  ;;  %v403_v20 = vpop.f32.mrb[1].mxu1 }
  0xdb   :  { %v200_v21 = vadd.f32 %v376_v17, %v190_v18 }
  0xdd   :  { %v201_v22 = vmax.f32 %v200_v21, 0.0 }
  0xdf   :  { %413 = vmatmul.mubr.msk.f32.vlgmr.msra.gmra.mrb[2].mxu0 %vm213_vm5, %v201_v22 }
 0x1b2   :  { %v283_v27 = vpop.f32.mrb[2].mxu0 }
 0x1b3   :  { %v284_v28 = vadd.f32 %v377_v26, %v283_v27  ;;  %v414_v29 = vpop.f32.mrb[3].mxu0 }
 0x1b5   :  { %v287_v30 = vmax.f32 %v284_v28, 0.0 }
 0x1b7   :  { %424 = vmatmul.mubr.msk.f32.vlgmr.msra.gmra.mrb[2].mxu1 %vm213_vm5, %v287_v30 }
 0x28a   :  { %v363_v32 = vpop.f32.mrb[2].mxu1 }
 0x28b   :  { %v364_v33 = vadd.f32 %v363_v32, %v293_v31  ;;  %v425_v34 = vpop.f32.mrb[3].mxu1 }
 0x28d   :  { %367 = vst.msk [vmem:[%s553_s9] sm:$0xff] %vm37_vm2, %v364_v33 }

</bundles_post_ra>
